<compile_context>
chip_gen: v7x
topology: tpu7x:2x2x1
jax: 0.10.0
libtpu: 0.0.40
codegen_flags: <defaults>
</compile_context>

<pallas_src>
import jax
import jax.numpy as jnp
from jax.experimental import pallas as pl
from jax.experimental.pallas import tpu as pltpu


# ----------------------------------------------------------------------------
# Kernel
# ----------------------------------------------------------------------------
def _attention_fusion_kernel(
    x1_ref, x2_ref,        # [TB, D1], [TB, D2]  streamed batch tiles
    wA2_ref, wB2_ref,      # [D1, 2],  [D2, 2]   zero-padded classifier weights
    bias2_ref,             # [1, 2]              [bA, bB]
    W1_ref, b1_ref,        # [2, 8],   [1, 8]    attention Linear(2, 8)
    w2d_ref, b2d_ref,      # [1, 8],   [1, 1]    W2[:,0]-W2[:,1], b2[0]-b2[1]
    out_ref,               # [TB, 1]
):
    # --- fused sub-model logits: one [TB, 2] slab (col0 = logitA, col1 = logitB)
    # Inputs go to the MXU in their native dtype; accumulation is f32.
    logits2 = (
        jnp.dot(x1_ref[...], wA2_ref[...], preferred_element_type=jnp.float32)
        + jnp.dot(x2_ref[...], wB2_ref[...], preferred_element_type=jnp.float32)
        + bias2_ref[...].astype(jnp.float32)
    )                                                       # [TB, 2] f32
    logitA = logits2[:, 0:1]                                # [TB, 1]
    logitB = logits2[:, 1:2]                                # [TB, 1]

    # --- attention MLP kept on the VPU/EUP (MXU lanes would be ~8/128 used):
    # h = tanh(concat_logits @ W1 + b1) expanded as broadcast FMAs.
    h = jnp.tanh(
        logitA * W1_ref[0:1, :] + logitB * W1_ref[1:2, :] + b1_ref[...]
    )                                                       # [TB, 8]

    # --- 2-way softmax == sigmoid of the attention-logit difference:
    # w0 = softmax(a)[:, 0] = sigmoid(a0 - a1),
    # a0 - a1 = h @ (W2[:,0] - W2[:,1]) + (b2[0] - b2[1])
    d = jnp.sum(h * w2d_ref[...], axis=-1, keepdims=True) + b2d_ref[...]  # [TB, 1]
    w0 = jax.nn.sigmoid(d)

    # --- both classifier probabilities in ONE EUP pass over the 2-lane slab
    probs = jax.nn.sigmoid(logits2)                         # [TB, 2]
    probA = probs[:, 0:1]
    probB = probs[:, 1:2]

    # weighted fusion (w1 = 1 - w0)
    out_ref[...] = (probB + w0 * (probA - probB)).astype(out_ref.dtype)


# ----------------------------------------------------------------------------
# Tile-size heuristic (HBM-bandwidth-bound kernel: bigger streamed tiles win)
# ----------------------------------------------------------------------------
def _auto_block_b(B, D1, D2, it1, it2, vmem_capacity, vmem_limit):
    LANE = 128
    # HBM bytes streamed per batch row (the only significant traffic).
    stream_per_row = D1 * it1 + D2 * it2

    # Per-step streamed-byte target: large enough that the ~0.35 us grid-step
    # overhead is <10-15% of per-step DMA time. Larger on v7x (<=64 MiB VMEM,
    # ~3.2 TB/s HBM) where the same bytes give less time to hide the overhead.
    target_stream = (8 if vmem_capacity <= 64 * 2**20 else 4) * 2**20
    blk = target_stream // max(stream_per_row, 1)

    # VMEM footprint per batch row: lane-padded, double-buffered x1/x2 tiles,
    # double-buffered (tb,1) output block, plus f32 epilogue intermediates
    # (logits2 / h / probs / d / w0 / fused), each lane-padded to 128.
    pad_l = lambda d: -(-d // LANE) * LANE
    pad_s = lambda d: -(-d // 8) * 8
    vmem_per_row = (
        2 * (pad_l(D1) * it1 + pad_l(D2) * it2)   # x1/x2 tiles, double buffered
        + 2 * LANE * 4                             # output block, double buffered
        + 8 * LANE * 4                             # epilogue f32 intermediates
    )
    params_vmem = 2 * (pad_s(D1) + pad_s(D2) + 16) * LANE * 4  # resident params
    avail = vmem_limit - params_vmem - 4 * 2**20               # compiler headroom
    blk = min(blk, max(32, avail // max(vmem_per_row, 1)))

    # Keep >= ~8 grid steps when the batch is big enough: pipelining needs >1
    # step and the "parallel" batch axis needs work for both v7x TensorCores.
    if B >= 8 * 32:
        blk = min(blk, max(32, B // 8))

    # Multiple of 32 -> native packing for f32/bf16/int8/fp8 sublane tiling.
    return max(32, (int(blk) // 32) * 32)


# ----------------------------------------------------------------------------
# Wrapper
# ----------------------------------------------------------------------------
def attention_fusion(x1, x2, params, *, block_b=None):
    """Runs the fused forward pass with a pipelined batch grid.

    x1: [B, D1], x2: [B, D2] (f32 or bf16). Returns [B] f32.
    """
    B, D1 = x1.shape
    B2, D2 = x2.shape
    assert B == B2
    it1 = jnp.dtype(x1.dtype).itemsize
    it2 = jnp.dtype(x2.dtype).itemsize

    # ---- per-generation VMEM budget (v5e/v6e: 128 MiB phys, v7x: 64 MiB/TC)
    try:
        vmem_capacity = int(pltpu.get_tpu_info().vmem_capacity_bytes)
    except Exception:
        vmem_capacity = 64 * 2**20   # conservative fallback (v7x per-TC)
    vmem_limit = int(min(int(vmem_capacity * 0.65), 96 * 2**20))

    # ---- tiny derived parameters (computed once per call, outside the kernel)
    f32 = jnp.float32
    wA = params["wA"].astype(x1.dtype)                               # [D1, 1]
    wB = params["wB"].astype(x2.dtype)                               # [D2, 1]
    wA2 = jnp.concatenate([wA, jnp.zeros_like(wA)], axis=1)          # [D1, 2]
    wB2 = jnp.concatenate([jnp.zeros_like(wB), wB], axis=1)          # [D2, 2]
    bias2 = jnp.concatenate([params["bA"], params["bB"]], axis=1).astype(f32)  # [1, 2]
    W1 = params["W1"].astype(f32)                                    # [2, 8]
    b1 = params["b1"].astype(f32)                                    # [1, 8]
    w2d = (params["W2"][:, 0] - params["W2"][:, 1]).reshape(1, -1).astype(f32)  # [1, 8]
    b2d = (params["b2"][:, 0:1] - params["b2"][:, 1:2]).astype(f32)  # [1, 1]

    # ---- batch tile
    if block_b is None:
        block_b = _auto_block_b(B, D1, D2, it1, it2, vmem_capacity, vmem_limit)
        align = 32
    else:
        align = 8                         # explicit caller override: f32 minimum
    tb = max(align, (int(block_b) // align) * align)
    if tb >= B:
        tb = B                            # single tile: block dim == full array dim

    # No wrapper-side padding: ragged last tile handled by Pallas partial-block
    # semantics (rows are independent; OOB rows are masked on write-back).
    grid = (pl.cdiv(B, tb),)

    def _const(shape):
        # parameter blocks are grid-invariant -> fetched once, stay resident
        return pl.BlockSpec(shape, lambda i: (0, 0))

    cost = pl.CostEstimate(
        flops=2 * B * (D1 + D2 + 16),
        transcendentals=12 * B,                        # tanh(8) + sigmoid(2+1)+exp-ish
        bytes_accessed=B * (D1 * it1 + D2 * it2) + B * 4,
    )

    out = pl.pallas_call(
        _attention_fusion_kernel,
        out_shape=jax.ShapeDtypeStruct((B, 1), jnp.float32),
        grid=grid,
        in_specs=[
            pl.BlockSpec((tb, D1), lambda i: (i, 0)),   # x1 tile (streamed)
            pl.BlockSpec((tb, D2), lambda i: (i, 0)),   # x2 tile (streamed)
            _const((D1, 2)),                            # wA2
            _const((D2, 2)),                            # wB2
            _const((1, 2)),                             # bias2
            _const((2, 8)),                             # W1
            _const((1, 8)),                             # b1
            _const((1, 8)),                             # w2diff
            _const((1, 1)),                             # b2diff
        ],
        out_specs=pl.BlockSpec((tb, 1), lambda i: (i, 0)),
        compiler_params=pltpu.CompilerParams(
            dimension_semantics=("parallel",),
            vmem_limit_bytes=vmem_limit,
        ),
        cost_estimate=cost,
    )(x1, x2, wA2, wB2, bias2, W1, b1, w2d, b2d)

    return out[:, 0]   # -> [B], matching the PyTorch return shape


# ----------------------------------------------------------------------------
# Parameters & pure-JAX reference
# ----------------------------------------------------------------------------
def init_params(key, d1, d2):
    ks = jax.random.split(key, 6)
    scale = 0.1
    return {
        # modelA / modelB: linear binary classifiers producing a scalar logit
        "wA": scale * jax.random.normal(ks[0], (d1, 1), jnp.float32),
        "bA": jnp.zeros((1, 1), jnp.float32),
        "wB": scale * jax.random.normal(ks[1], (d2, 1), jnp.float32),
        "bB": jnp.zeros((1, 1), jnp.float32),
        # attention: Linear(2, 8) -> Tanh -> Linear(8, 2) -> Softmax(dim=1)
        "W1": scale * jax.random.normal(ks[2], (2, 8), jnp.float32),
        "b1": scale * jax.random.normal(ks[3], (1, 8), jnp.float32),
        "W2": scale * jax.random.normal(ks[4], (8, 2), jnp.float32),
        "b2": scale * jax.random.normal(ks[5], (1, 2), jnp.float32),
    }


def reference_forward(x1, x2, p):
    """Pure-JAX reference of the PyTorch forward pass for verification."""
    logitA = x1 @ p["wA"][:, 0] + p["bA"][0, 0]          # [B]
    logitB = x2 @ p["wB"][:, 0] + p["bB"][0, 0]          # [B]
    concat = jnp.stack([logitA, logitB], axis=1)         # [B, 2]
    h = jnp.tanh(concat @ p["W1"] + p["b1"])             # [B, 8]
    w = jax.nn.softmax(h @ p["W2"] + p["b2"], axis=1)    # [B, 2]
    probA = jax.nn.sigmoid(logitA)
    probB = jax.nn.sigmoid(logitB)
    return w[:, 0] * probA + w[:, 1] * probB             # [B]


if __name__ == "__main__":
    key = jax.random.PRNGKey(0)
    kx1, kx2, kp, kx3, kx4 = jax.random.split(key, 5)

    # Small shapes consistent with the module: one feature vector per sub-model.
    B, D1, D2 = 16, 32, 48
    x1 = jax.random.normal(kx1, (B, D1), jnp.float32)
    x2 = jax.random.normal(kx2, (B, D2), jnp.float32)
    params = init_params(kp, D1, D2)

    # Auto-tiled path (single tile at this tiny batch).
    out = jax.block_until_ready(attention_fusion(x1, x2, params))
    ref = reference_forward(x1, x2, params)
    assert out.shape == (B,)
    assert jnp.allclose(out, ref, atol=1e-5, rtol=1e-5), (out, ref)

    # Multi-tile path with a ragged (partial) last block: B=20, tb=8 -> grid=3.
    Br = 20
    x1r = jax.random.normal(kx3, (Br, D1), jnp.float32)
    x2r = jax.random.normal(kx4, (Br, D2), jnp.float32)
    outr = jax.block_until_ready(attention_fusion(x1r, x2r, params, block_b=8))
    refr = reference_forward(x1r, x2r, params)
    assert outr.shape == (Br,)
    assert jnp.allclose(outr, refr, atol=1e-5, rtol=1e-5), (outr, refr)

    print("KERNEL_OK")
</pallas_src>

<mosaic_0001>
module attributes {stable_mosaic.version = 11 : i64} {
  func.func @_attention_fusion_kernel(%arg0: i32, %arg1: memref<16x32xf32, #tpu.memory_space<vmem>>, %arg2: memref<16x48xf32, #tpu.memory_space<vmem>>, %arg3: memref<32x2xf32, #tpu.memory_space<vmem>>, %arg4: memref<48x2xf32, #tpu.memory_space<vmem>>, %arg5: memref<1x2xf32, #tpu.memory_space<vmem>>, %arg6: memref<2x8xf32, #tpu.memory_space<vmem>>, %arg7: memref<1x8xf32, #tpu.memory_space<vmem>>, %arg8: memref<1x8xf32, #tpu.memory_space<vmem>>, %arg9: memref<1x1xf32, #tpu.memory_space<vmem>>, %arg10: memref<16x1xf32, #tpu.memory_space<vmem>>) attributes {dimension_semantics = [#tpu.dimension_semantics<parallel>], iteration_bounds = array<i64: 1>, scalar_prefetch = 0 : i64, scratch_operands = 0 : i64, tpu.core_type = #tpu.core_type<tc>, window_params = [{transform_indices = @transform_0, window_bounds = array<i64: 16, 32>}, {transform_indices = @transform_1, window_bounds = array<i64: 16, 48>}, {pipeline_mode = #tpu.pipeline_mode<synchronous>, transform_indices = @transform_2, window_bounds = array<i64: 32, 2>}, {pipeline_mode = #tpu.pipeline_mode<synchronous>, transform_indices = @transform_3, window_bounds = array<i64: 48, 2>}, {pipeline_mode = #tpu.pipeline_mode<synchronous>, transform_indices = @transform_4, window_bounds = array<i64: 1, 2>}, {pipeline_mode = #tpu.pipeline_mode<synchronous>, transform_indices = @transform_5, window_bounds = array<i64: 2, 8>}, {pipeline_mode = #tpu.pipeline_mode<synchronous>, transform_indices = @transform_6, window_bounds = array<i64: 1, 8>}, {pipeline_mode = #tpu.pipeline_mode<synchronous>, transform_indices = @transform_7, window_bounds = array<i64: 1, 8>}, {pipeline_mode = #tpu.pipeline_mode<synchronous>, transform_indices = @transform_8, window_bounds = array<i64: 1, 1>}, {transform_indices = @transform_9, window_bounds = array<i64: 16, 1>}]} {
    %c0 = arith.constant 0 : index
    %c0_0 = arith.constant 0 : index
    %0 = vector.load %arg1[%c0, %c0_0] : memref<16x32xf32, #tpu.memory_space<vmem>>, vector<16x32xf32>
    %c0_1 = arith.constant 0 : index
    %c0_2 = arith.constant 0 : index
    %1 = vector.load %arg3[%c0_1, %c0_2] : memref<32x2xf32, #tpu.memory_space<vmem>>, vector<32x2xf32>
    %cst = arith.constant dense<0.000000e+00> : vector<16x2xf32>
    %2 = tpu.matmul %0, %1, %cst {dimension_numbers = #tpu.dot_dimension_numbers<[1], [0], [0], [1], [0, 0, 1, 1], [], []>} : vector<16x32xf32>, vector<32x2xf32>, vector<16x2xf32> -> vector<16x2xf32>
    %c0_3 = arith.constant 0 : index
    %c0_4 = arith.constant 0 : index
    %3 = vector.load %arg2[%c0_3, %c0_4] : memref<16x48xf32, #tpu.memory_space<vmem>>, vector<16x48xf32>
    %c0_5 = arith.constant 0 : index
    %c0_6 = arith.constant 0 : index
    %4 = vector.load %arg4[%c0_5, %c0_6] : memref<48x2xf32, #tpu.memory_space<vmem>>, vector<48x2xf32>
    %cst_7 = arith.constant dense<0.000000e+00> : vector<16x2xf32>
    %5 = tpu.matmul %3, %4, %cst_7 {dimension_numbers = #tpu.dot_dimension_numbers<[1], [0], [0], [1], [0, 0, 1, 1], [], []>} : vector<16x48xf32>, vector<48x2xf32>, vector<16x2xf32> -> vector<16x2xf32>
    %6 = arith.addf %2, %5 : vector<16x2xf32>
    %c0_8 = arith.constant 0 : index
    %c0_9 = arith.constant 0 : index
    %7 = vector.load %arg5[%c0_8, %c0_9] : memref<1x2xf32, #tpu.memory_space<vmem>>, vector<1x2xf32>
    %8 = vector.broadcast %7 : vector<1x2xf32> to vector<16x2xf32>
    %9 = arith.addf %6, %8 : vector<16x2xf32>
    %10 = vector.extract_strided_slice %9 {offsets = [0, 0], sizes = [16, 1], strides = [1, 1]} : vector<16x2xf32> to vector<16x1xf32>
    %11 = vector.extract_strided_slice %9 {offsets = [0, 1], sizes = [16, 1], strides = [1, 1]} : vector<16x2xf32> to vector<16x1xf32>
    %c0_10 = arith.constant 0 : index
    %c0_11 = arith.constant 0 : index
    %12 = vector.load %arg6[%c0_10, %c0_11] : memref<2x8xf32, #tpu.memory_space<vmem>>, vector<1x8xf32>
    %13 = vector.broadcast %10 : vector<16x1xf32> to vector<16x8xf32>
    %14 = vector.broadcast %12 : vector<1x8xf32> to vector<16x8xf32>
    %15 = arith.mulf %13, %14 : vector<16x8xf32>
    %c1 = arith.constant 1 : index
    %c0_12 = arith.constant 0 : index
    %16 = vector.load %arg6[%c1, %c0_12] : memref<2x8xf32, #tpu.memory_space<vmem>>, vector<1x8xf32>
    %17 = vector.broadcast %11 : vector<16x1xf32> to vector<16x8xf32>
    %18 = vector.broadcast %16 : vector<1x8xf32> to vector<16x8xf32>
    %19 = arith.mulf %17, %18 : vector<16x8xf32>
    %20 = arith.addf %15, %19 : vector<16x8xf32>
    %c0_13 = arith.constant 0 : index
    %c0_14 = arith.constant 0 : index
    %21 = vector.load %arg7[%c0_13, %c0_14] : memref<1x8xf32, #tpu.memory_space<vmem>>, vector<1x8xf32>
    %22 = vector.broadcast %21 : vector<1x8xf32> to vector<16x8xf32>
    %23 = arith.addf %20, %22 : vector<16x8xf32>
    %24 = math.tanh %23 : vector<16x8xf32>
    %c0_15 = arith.constant 0 : index
    %c0_16 = arith.constant 0 : index
    %25 = vector.load %arg8[%c0_15, %c0_16] : memref<1x8xf32, #tpu.memory_space<vmem>>, vector<1x8xf32>
    %26 = vector.broadcast %25 : vector<1x8xf32> to vector<16x8xf32>
    %27 = arith.mulf %24, %26 : vector<16x8xf32>
    %cst_17 = arith.constant dense<0.000000e+00> : vector<16xf32>
    %28 = vector.multi_reduction <add>, %27, %cst_17 [1] : vector<16x8xf32> to vector<16xf32>
    %29 = vector.shape_cast %28 : vector<16xf32> to vector<16x1xf32>
    %c0_18 = arith.constant 0 : index
    %c0_19 = arith.constant 0 : index
    %30 = vector.load %arg9[%c0_18, %c0_19] : memref<1x1xf32, #tpu.memory_space<vmem>>, vector<1x1xf32>
    %31 = vector.broadcast %30 : vector<1x1xf32> to vector<16x1xf32>
    %32 = arith.addf %29, %31 : vector<16x1xf32>
    %33 = arith.negf %32 : vector<16x1xf32>
    %34 = math.exp %33 : vector<16x1xf32>
    %cst_20 = arith.constant 1.000000e+00 : f32
    %35 = vector.broadcast %cst_20 : f32 to vector<16x1xf32>
    %36 = arith.addf %35, %34 : vector<16x1xf32>
    %37 = arith.divf %35, %36 : vector<16x1xf32>
    %38 = arith.negf %9 : vector<16x2xf32>
    %39 = math.exp %38 : vector<16x2xf32>
    %cst_21 = arith.constant 1.000000e+00 : f32
    %40 = vector.broadcast %cst_21 : f32 to vector<16x2xf32>
    %41 = arith.addf %40, %39 : vector<16x2xf32>
    %42 = arith.divf %40, %41 : vector<16x2xf32>
    %43 = vector.extract_strided_slice %42 {offsets = [0, 0], sizes = [16, 1], strides = [1, 1]} : vector<16x2xf32> to vector<16x1xf32>
    %44 = vector.extract_strided_slice %42 {offsets = [0, 1], sizes = [16, 1], strides = [1, 1]} : vector<16x2xf32> to vector<16x1xf32>
    %45 = arith.subf %43, %44 : vector<16x1xf32>
    %46 = arith.mulf %37, %45 : vector<16x1xf32>
    %47 = arith.addf %44, %46 : vector<16x1xf32>
    %c0_22 = arith.constant 0 : index
    %c0_23 = arith.constant 0 : index
    %48 = vector.load %arg10[%c0_22, %c0_23] : memref<16x1xf32, #tpu.memory_space<vmem>>, vector<16x1xf32>
    tpu.vector_store %arg10[%c0_22, %c0_23], %47 {strides = array<i32>} : memref<16x1xf32, #tpu.memory_space<vmem>>, vector<16x1xf32>,
    return
  }
  func.func @transform_0(%arg0: i32) -> (i32, i32) {
    %c0_i32 = arith.constant 0 : i32
    %c0_i32_0 = arith.constant 0 : i32
    return %arg0, %c0_i32 : i32, i32
  }
  func.func @transform_1(%arg0: i32) -> (i32, i32) {
    %c0_i32 = arith.constant 0 : i32
    %c0_i32_0 = arith.constant 0 : i32
    return %arg0, %c0_i32 : i32, i32
  }
  func.func @transform_2(%arg0: i32) -> (i32, i32) {
    %c0_i32 = arith.constant 0 : i32
    %c0_i32_0 = arith.constant 0 : i32
    %c0_i32_1 = arith.constant 0 : i32
    return %c0_i32, %c0_i32_0 : i32, i32
  }
  func.func @transform_3(%arg0: i32) -> (i32, i32) {
    %c0_i32 = arith.constant 0 : i32
    %c0_i32_0 = arith.constant 0 : i32
    %c0_i32_1 = arith.constant 0 : i32
    return %c0_i32, %c0_i32_0 : i32, i32
  }
  func.func @transform_4(%arg0: i32) -> (i32, i32) {
    %c0_i32 = arith.constant 0 : i32
    %c0_i32_0 = arith.constant 0 : i32
    %c0_i32_1 = arith.constant 0 : i32
    return %c0_i32, %c0_i32_0 : i32, i32
  }
  func.func @transform_5(%arg0: i32) -> (i32, i32) {
    %c0_i32 = arith.constant 0 : i32
    %c0_i32_0 = arith.constant 0 : i32
    %c0_i32_1 = arith.constant 0 : i32
    return %c0_i32, %c0_i32_0 : i32, i32
  }
  func.func @transform_6(%arg0: i32) -> (i32, i32) {
    %c0_i32 = arith.constant 0 : i32
    %c0_i32_0 = arith.constant 0 : i32
    %c0_i32_1 = arith.constant 0 : i32
    return %c0_i32, %c0_i32_0 : i32, i32
  }
  func.func @transform_7(%arg0: i32) -> (i32, i32) {
    %c0_i32 = arith.constant 0 : i32
    %c0_i32_0 = arith.constant 0 : i32
    %c0_i32_1 = arith.constant 0 : i32
    return %c0_i32, %c0_i32_0 : i32, i32
  }
  func.func @transform_8(%arg0: i32) -> (i32, i32) {
    %c0_i32 = arith.constant 0 : i32
    %c0_i32_0 = arith.constant 0 : i32
    %c0_i32_1 = arith.constant 0 : i32
    return %c0_i32, %c0_i32_0 : i32, i32
  }
  func.func @transform_9(%arg0: i32) -> (i32, i32) {
    %c0_i32 = arith.constant 0 : i32
    %c0_i32_0 = arith.constant 0 : i32
    return %arg0, %c0_i32 : i32, i32
  }
}

</mosaic_0001>

<bundles_post_ra>
// kernel: tpu_custom_call.1
= control target key start
LH: loop header
LB: loop body
LE: loop exit
PB: predicated region body
PF: predicated region fallthrough
CT: control target
= control target key end

     0   :  { %vm130_vm0 = vcmask 261120   ;;  %vm48_vm1 = vcmask 392192   ;;  %v455_v19 = vmov 1   ;;  %v456_v20 = vmov 0   ;;  %s581_s3 = inlined_call_operand.vmem [shape: f32[48,2], index: 3, kind: input, shape index: {}]   ;;  %s582_s2 = inlined_call_operand.vmem [shape: f32[32,2], index: 2, kind: input, shape index: {}]   ;;  %s583_s0 = inlined_call_operand.vmem [shape: f32[16,32], index: 0, kind: input, shape index: {}]   ;;  %s584_s1 = inlined_call_operand.vmem [shape: f32[16,48], index: 1, kind: input, shape index: {}]   ;;  %s585_s4 = inlined_call_operand.vmem [shape: f32[1,2], index: 4, kind: input, shape index: {}]   ;;  %s586_s8 = inlined_call_operand.<no memory space> [shape: f32[1,1], index: 8, kind: input, shape index: {}]   ;;  %s587_s5 = inlined_call_operand.vmem [shape: f32[2,8], index: 5, kind: input, shape index: {}]   ;;  %s588_s6 = inlined_call_operand.vmem [shape: f32[1,8], index: 6, kind: input, shape index: {}]   ;;  %s589_s7 = inlined_call_operand.vmem [shape: f32[1,8], index: 7, kind: input, shape index: {}]   ;;  %s590_s9 = inlined_call_operand.vmem [shape: f32[16,1], index: 9, kind: output, shape index: {}]  }
   0x1   :  { %v42_v0 = vld [vmem:[%s581_s3] sm:$0xff]  ;;  %v43_v1 = vld [vmem:[%s581_s3 + $0x8] sm:$0xff]  ;;  %v44_v5 = vld [vmem:[%s581_s3 + $0x10] sm:$0xff]  ;;  %433 = vset.pattern.permute.xlu1 %v455_v19  ;;  %432 = vset.pattern.permute.xlu0 %v456_v20  ;;  %v14_v30 = vstv %s586_s8  ;;  %vm275_vm2 = vcmask 64512   ;;  %vm345_vm3 = vcmask 7168  }
   0x2   :  { %v36_v2 = vld [vmem:[%s582_s2] sm:$0xff]  ;;  %v406_v3 = vpack.c.bf16 %v43_v1, %v42_v0  ;;  %v37_v4 = vld [vmem:[%s582_s2 + $0x8] sm:$0xff]  ;;  %v45_v6 = vld [vmem:[%s581_s3 + $0x18] sm:$0xff]  ;;  %15 = vst [vmem:[#allocation2] sm:$0x1] %v14_v30 }
   0x3   :  { %v418_v7 = vpack.c.bf16 %v37_v4, %v36_v2  ;;  %v410_v8 = vpack.c.bf16 %v45_v6, %v44_v5  ;;  %v38_v9 = vld [vmem:[%s582_s2 + $0x10] sm:$0xff]  ;;  %v39_v10 = vld [vmem:[%s582_s2 + $0x18] sm:$0xff]  ;;  %v46_v11 = vld [vmem:[%s581_s3 + $0x20] sm:$0xff] }
   0x4   :  { %407 = vmatprep.subr.bf16.mxu1 %v406_v3  ;;  %v422_v12 = vpack.c.bf16 %v39_v10, %v38_v9  ;;  %v47_v13 = vld [vmem:[%s581_s3 + $0x28] sm:$0xff]  ;;  %v34_v14 = vld [vmem:[%s583_s0] sm:$0xff] }
   0x5   :  { %409 = vmatpush3.bf16.msra.mxu1 %v406_v3  ;;  %419 = vmatprep.subr.bf16.mxu0 %v418_v7  ;;  %v40_v15 = vld [vmem:[%s584_s1] sm:$0xff]  ;;  %v414_v16 = vpack.c.bf16 %v47_v13, %v46_v11  ;;  %v35_v17 = vld [vmem:[%s583_s0 + $0x8] sm:$0xff] }
   0x6   :  { %411 = vmatprep.subr.bf16.mxu1 %v410_v8  ;;  %421 = vmatpush3.bf16.msra.mxu0 %v418_v7  ;;  %v41_v18 = vld [vmem:[%s584_s1 + $0x8] sm:$0xff]  ;;  %v356_v25 = vld [vmem:[%s585_s4] ss:$0 sm:$0xff]  ;;  %v358_v31 = vld [vmem:[%s587_s5 + $0x1] ss:$0 sm:$0xff] }
   0x7   :  { %423 = vmatprep.subr.bf16.mxu0 %v422_v12  ;;  %403 = vmatprep.mubr.msk.f32.mxu0 %vm130_vm0, %v34_v14  ;;  %v357_v32 = vld [vmem:[%s587_s5] ss:$0 sm:$0xff] }
   0x8   :  { %392 = vmatprep.mubr.msk.f32.mxu1 %vm48_vm1, %v40_v15  ;;  %v359_v37 = vld [vmem:[%s588_s6] ss:$0 sm:$0xff]  ;;  %s457_s6 = smov 127  }
   0x9   :  { %413 = vmatpush3.bf16.msra.mxu1 %v410_v8  ;;  %v360_v48 = vld [vmem:[%s589_s7] ss:$0 sm:$0xff]  ;;  %s458_s7 = smov 1  }
   0xa   :  { %415 = vmatprep.subr.bf16.mxu1 %v414_v16  ;;  %425 = vmatpush3.bf16.msra.mxu0 %v422_v12  ;;  %v361_v61 = vld [vmem:[#allocation2] ss:$0 sm:$0xff] }
   0xd   :  { %417 = vmatpush3.bf16.msra.mxu1 %v414_v16  ;;  %404 = vmatmul.mubr.msk.f32.vlgmr.msra.gmra.mrb[0].mxu0 %vm130_vm0, %v35_v17 }
  0x10   :  { %393 = vmatmul.mubr.msk.f32.vlgmr.msra.gmra.mrb[0].mxu1 %vm48_vm1, %v41_v18 }
  0xe0   :  { %v405_v21 = vpop.f32.mrb[0].mxu0 }
  0xe1   :  { %v203_v22 = vpop.f32.mrb[1].mxu0 }
  0xe3   :  { %v394_v23 = vpop.f32.mrb[0].mxu1 }
  0xe4   :  { %v209_v24 = vadd.f32 %v405_v21, %v394_v23  ;;  %v121_v26 = vpop.f32.mrb[1].mxu1 }
  0xe5   :  { %v204_v27 = vadd.f32 %v203_v22, %v121_v26 }
  0xe6   :  { %v220_v29 = vadd.f32 %v356_v25, %v209_v24 }
  0xe7   :  { %v219_v28 = vadd.f32 %v356_v25, %v204_v27 }
  0xe8   :  { %v365_v46 = vmul.f32 -1.442695, %v220_v29 }
  0xe9   :  { %240 = vperm.xlu1 %433, %v219_v28   ;;  %224 = vperm.xlu0 %432, %v219_v28   ;;  %v364_v47 = vmul.f32 -1.442695, %v219_v28 }
  0xed   :  { %244 = vperm.xlu1 %433, %v220_v29   ;;  %229 = vperm.xlu0 %432, %v220_v29  }
  0xf1   :  { %434 = vset.pattern.permute.xlu0 %v455_v19 }
 0x168   :  { %v241_v33 = vpop.permute.xlu1 %240  ;;  %v225_v34 = vpop.permute.xlu0 %224 }
 0x169   :  { %v251_v35 = vmul.f32 %v358_v31, %v241_v33  ;;  %v236_v36 = vmul.f32 %v357_v32, %v225_v34 }
 0x16b   :  { %v253_v38 = vadd.f32 %v251_v35, %v236_v36 }
 0x16c   :  { %v245_v39 = vpop.permute.xlu1 %244  ;;  %v230_v40 = vpop.permute.xlu0 %229 }
 0x16d   :  { %v262_v41 = vadd.f32 %v359_v37, %v253_v38  ;;  %v252_v42 = vmul.f32 %v358_v31, %v245_v39  ;;  %v237_v43 = vmul.f32 %v357_v32, %v230_v40 }
 0x16f   :  { %435 = vtanh.f32 %v262_v41  ;;  %v254_v44 = vadd.f32 %v252_v42, %v237_v43 }
 0x171   :  { %v263_v45 = vadd.f32 %v359_v37, %v254_v44 }
 0x173   :  { %437 = vtanh.f32 %v263_v45 }
 0x174   :  { %439 = vpow2.f32 %v365_v46 }
 0x175   :  { %441 = vpow2.f32 %v364_v47 }
 0x179   :  { %v436_v49 = vpop.eup %435 }
 0x17a   :  { %v273_v50 = vmul.f32 %v436_v49, %v360_v48 }
 0x17c   :  { %v276_v51 = vsel %vm275_vm2, %v273_v50, 0.0 }
 0x17d   :  { %v438_v52 = vpop.eup %437  ;;  %277 = vadd.xlane.f32.xlu0 %v276_v51 }
 0x17e   :  { %v274_v53 = vmul.f32 %v438_v52, %v360_v48  ;;  %v440_v54 = vpop.eup %439 }
 0x17f   :  { %v442_v56 = vpop.eup %441  ;;  %v310_v57 = vadd.f32 1.0, %v440_v54 }
 0x180   :  { %v279_v55 = vsel %vm275_vm2, %v274_v53, 0.0  ;;  %v309_v58 = vadd.f32 1.0, %v442_v56 }
 0x181   :  { %280 = vadd.xlane.f32.xlu1 %v279_v55  ;;  %443 = vrcp.f32 %v310_v57 }
 0x182   :  { %445 = vrcp.f32 %v309_v58 }
 0x18b   :  { %v444_v59 = vpop.eup %443 }
 0x18c   :  { %v446_v60 = vpop.eup %445 }
 0x192   :  { %319 = vrot.lane.b32.xlu1 %v444_v59, %s457_s6 }
 0x193   :  { %317 = vrot.lane.b32.xlu0 %v446_v60, %s457_s6 }
 0x20a   :  { %v278_v62 = vpop.xlane.xlu0 %277 }
 0x20b   :  { %v289_v63 = vadd.f32 %v361_v61, %v278_v62 }
 0x20d   :  { %v362_v0 = vmul.f32 -1.442695, %v289_v63 }
 0x20e   :  { %v281_v1 = vpop.xlane.xlu1 %280  ;;  %v318_v8 = vpop.permute.xlu0 %317 }
 0x20f   :  { %447 = vpow2.f32 %v362_v0  ;;  %v290_v2 = vadd.f32 %v361_v61, %v281_v1  ;;  %v323_v9 = vsub.f32 %v446_v60, %v318_v8 }
 0x211   :  { %v363_v3 = vmul.f32 -1.442695, %v290_v2 }
 0x212   :  { %v320_v11 = vpop.permute.xlu1 %319 }
 0x213   :  { %449 = vpow2.f32 %v363_v3  ;;  %v324_v13 = vsub.f32 %v444_v59, %v320_v11 }
 0x219   :  { %v448_v4 = vpop.eup %447 }
 0x21a   :  { %v297_v5 = vadd.f32 1.0, %v448_v4 }
 0x21c   :  { %451 = vrcp.f32 %v297_v5 }
 0x21d   :  { %v450_v6 = vpop.eup %449 }
 0x21e   :  { %v298_v7 = vadd.f32 1.0, %v450_v6 }
 0x220   :  { %453 = vrcp.f32 %v298_v7 }
 0x226   :  { %v452_v10 = vpop.eup %451 }
 0x227   :  { %v325_v12 = vmul.f32 %v452_v10, %v323_v9 }
 0x229   :  { %329 = vrot.lane.b32.xlu0 %v325_v12, %s458_s7 }
 0x22a   :  { %v454_v14 = vpop.eup %453 }
 0x22b   :  { %v326_v15 = vmul.f32 %v454_v14, %v324_v13 }
 0x22d   :  { %331 = vrot.lane.b32.xlu1 %v326_v15, %s458_s7 }
 0x29b   :  { %v330_v16 = vpop.permute.xlu0 %329 }
 0x29c   :  { %v335_v17 = vadd.f32 %v446_v60, %v330_v16 }
 0x29e   :  { %339 = vrot.lane.b32.xlu0 %v335_v17, %s457_s6 }
 0x29f   :  { %v332_v18 = vpop.permute.xlu1 %331 }
 0x2a0   :  { %v336_v19 = vadd.f32 %v444_v59, %v332_v18 }
 0x2a2   :  { %341 = vrot.lane.b32.xlu1 %v336_v19, %s457_s6 }
 0x310   :  { %v340_v20 = vpop.permute.xlu0 %339 }
 0x311   :  { %346 = vst.msk [vmem:[%s590_s9] sm:$0xff] %vm345_vm3, %v340_v20 }
 0x314   :  { %v342_v21 = vpop.permute.xlu1 %341 }
 0x315   :  { %347 = vst.msk [vmem:[%s590_s9 + $0x8] sm:$0xff] %vm345_vm3, %v342_v21 }

</bundles_post_ra>
